<compile_context>
chip_gen: v7x
topology: tpu7x:2x2x1
jax: 0.10.0
libtpu: 0.0.40
codegen_flags: <defaults>
</compile_context>

<pallas_src>
import jax
import jax.numpy as jnp
from jax.experimental import pallas as pl
from jax.experimental.pallas import tpu as pltpu

_LANE = 1024        # lane-dense slab width: large multiple of 128
_MIN_STEPS = 8      # target minimum number of grid steps for mid-size inputs


def _default_row_block() -> int:
    """Rows per block.  4 MiB f32 blocks for v5e/v6e, 8 MiB on v7x."""
    try:
        kind = jax.devices()[0].device_kind.lower()
        if "v7" in kind:
            return 2048     # 8 MiB f32 block: amortizes per-step overhead at 3.2 TB/s
    except Exception:
        pass
    return 1024             # 4 MiB f32 block: fine for v5e / v6e


def _pick_tm(rows: int, row_block: int) -> int:
    """Block rows: multiple of 8 (or the full slab), >= _MIN_STEPS steps when possible."""
    if rows < 8:
        return rows         # one block covering the whole (tiny) slab
    return min(row_block, max(8, (rows // _MIN_STEPS) // 8 * 8))


def _sigmoid_kernel(x_ref, o_ref):
    # Exact sigmoid.  The kernel is HBM-bandwidth-bound on every TPU
    # generation, so the f32 exp (EUP) and full-precision divide are fully
    # hidden under the DMA -- no need for the approximate reciprocal.
    x = x_ref[...].astype(jnp.float32)
    o_ref[...] = (1.0 / (1.0 + jnp.exp(-x))).astype(o_ref.dtype)


def _sigmoid_slab(x2d: jax.Array, row_block: int) -> jax.Array:
    """Tiled, pipelined elementwise sigmoid over a lane-dense (rows, 1024) slab."""
    rows, lanes = x2d.shape
    tm = _pick_tm(rows, row_block)
    return pl.pallas_call(
        _sigmoid_kernel,
        out_shape=jax.ShapeDtypeStruct((rows, lanes), x2d.dtype),
        grid=(pl.cdiv(rows, tm),),              # partial last block is masked
        in_specs=[pl.BlockSpec((tm, lanes), lambda i: (i, 0))],
        out_specs=pl.BlockSpec((tm, lanes), lambda i: (i, 0)),
        compiler_params=pltpu.CompilerParams(
            dimension_semantics=("parallel",),  # megacore-shardable on v7x
            vmem_limit_bytes=48 << 20,          # room for 8 MiB blocks, < v7x 64 MiB
        ),
    )(x2d)


@jax.jit
def mlp_forward(x: jax.Array) -> jax.Array:
    """MLP.forward (== nn.Sigmoid) via a lane-dense Pallas TPU kernel."""
    orig_shape = x.shape
    total = x.size
    if total == 0:
        return x

    row_block = _default_row_block()
    rows = total // _LANE

    if rows == 0:
        # Tiny tensor (< one lane-row): a Pallas launch buys nothing; XLA's
        # elementwise sigmoid is already a single HBM pass.
        return jax.nn.sigmoid(x)

    if total % _LANE == 0:
        # Fast path: zero extra HBM traffic.  reshape of a contiguous array
        # is a bitcast; the kernel's own read + write are the only passes.
        return _sigmoid_slab(x.reshape(rows, _LANE), row_block).reshape(orig_shape)

    # Ragged element count: kernel on the lane-aligned prefix, trivial jnp
    # sigmoid on the (< 1024-element) tail.
    # TODO(synk): the final concatenate re-materializes the prefix (one extra
    # HBM pass); only non-1024-multiple element counts pay this.
    main = rows * _LANE
    flat = x.reshape(-1)
    y_main = _sigmoid_slab(flat[:main].reshape(rows, _LANE), row_block).reshape(-1)
    y_tail = jax.nn.sigmoid(flat[main:])
    return jnp.concatenate([y_main, y_tail]).reshape(orig_shape)


if __name__ == "__main__":
    key = jax.random.PRNGKey(0)
    k0, k1, k2, k3 = jax.random.split(key, 4)

    # Shape consistent with the script's `torch.reshape(input, (-1, 1, 2, 2))`;
    # 512*1*2*2 = 2048 elements -> lane-aligned zero-copy kernel path.
    x = jax.random.normal(k0, (512, 1, 2, 2), dtype=jnp.float32)
    y = jax.block_until_ready(mlp_forward(x))
    assert y.shape == x.shape and y.dtype == x.dtype
    assert jnp.allclose(y, jax.nn.sigmoid(x), atol=1e-5, rtol=1e-5)

    # Larger, multi-block pipelined path (grid > 1, lane-aligned).
    x_big = jax.random.normal(k1, (8, 16, 64, 128), dtype=jnp.float32)
    y_big = jax.block_until_ready(mlp_forward(x_big))
    assert jnp.allclose(y_big, jax.nn.sigmoid(x_big), atol=1e-5, rtol=1e-5)

    # Lane-aligned but with a partial (masked) last row-block.
    x_part = jax.random.normal(k2, (10, 32, 32), dtype=jnp.float32)
    y_part = jax.block_until_ready(mlp_forward(x_part))
    assert jnp.allclose(y_part, jax.nn.sigmoid(x_part), atol=1e-5, rtol=1e-5)

    # Ragged element count: kernel prefix + jnp tail.
    x_rag = jax.random.normal(k3, (3, 5, 7, 11), dtype=jnp.float32)
    y_rag = jax.block_until_ready(mlp_forward(x_rag))
    assert jnp.allclose(y_rag, jax.nn.sigmoid(x_rag), atol=1e-5, rtol=1e-5)

    print("KERNEL_OK")
</pallas_src>

<mosaic_0001>
module attributes {stable_mosaic.version = 11 : i64} {
  func.func @_sigmoid_kernel(%arg0: i32, %arg1: memref<2x1024xf32, #tpu.memory_space<vmem>>, %arg2: memref<2x1024xf32, #tpu.memory_space<vmem>>) attributes {dimension_semantics = [#tpu.dimension_semantics<parallel>], iteration_bounds = array<i64: 1>, scalar_prefetch = 0 : i64, scratch_operands = 0 : i64, tpu.core_type = #tpu.core_type<tc>, window_params = [{transform_indices = @transform_0, window_bounds = array<i64: 2, 1024>}, {transform_indices = @transform_1, window_bounds = array<i64: 2, 1024>}]} {
    %c0 = arith.constant 0 : index
    %c0_0 = arith.constant 0 : index
    %0 = vector.load %arg1[%c0, %c0_0] : memref<2x1024xf32, #tpu.memory_space<vmem>>, vector<2x1024xf32>
    %cst = arith.constant 0.000000e+00 : f32
    %1 = vector.broadcast %cst : f32 to vector<2x1024xf32>
    %2 = arith.subf %1, %0 : vector<2x1024xf32>
    %3 = math.exp %2 : vector<2x1024xf32>
    %cst_1 = arith.constant 1.000000e+00 : f32
    %4 = vector.broadcast %cst_1 : f32 to vector<2x1024xf32>
    %5 = arith.addf %4, %3 : vector<2x1024xf32>
    %cst_2 = arith.constant 1.000000e+00 : f32
    %6 = vector.broadcast %cst_2 : f32 to vector<2x1024xf32>
    %7 = arith.divf %6, %5 : vector<2x1024xf32>
    %c0_3 = arith.constant 0 : index
    %c0_4 = arith.constant 0 : index
    %8 = vector.load %arg2[%c0_3, %c0_4] : memref<2x1024xf32, #tpu.memory_space<vmem>>, vector<2x1024xf32>
    tpu.vector_store %arg2[%c0_3, %c0_4], %7 {strides = array<i32>} : memref<2x1024xf32, #tpu.memory_space<vmem>>, vector<2x1024xf32>,
    return
  }
  func.func @transform_0(%arg0: i32) -> (i32, i32) {
    %c0_i32 = arith.constant 0 : i32
    %c0_i32_0 = arith.constant 0 : i32
    return %arg0, %c0_i32 : i32, i32
  }
  func.func @transform_1(%arg0: i32) -> (i32, i32) {
    %c0_i32 = arith.constant 0 : i32
    %c0_i32_0 = arith.constant 0 : i32
    return %arg0, %c0_i32 : i32, i32
  }
}

</mosaic_0001>

<bundles_post_ra>
// kernel: mlp_forward.1
= control target key start
LH: loop header
LB: loop body
LE: loop exit
PB: predicated region body
PF: predicated region fallthrough
CT: control target
= control target key end

     0   :  { %s58_s0 = inlined_call_operand.vmem [shape: f32[2,1024], index: 0, kind: input, shape index: {}]   ;;  %s59_s1 = inlined_call_operand.vmem [shape: f32[2,1024], index: 1, kind: output, shape index: {}]  }
   0x1   :  { %v8_v0 = vld [vmem:[%s58_s0] sm:$0xff]  ;;  %v9_v1 = vld [vmem:[%s58_s0 + $0x8] sm:$0xff] }
   0x2   :  { %v10_v2 = vsub.f32 0.0, %v8_v0  ;;  %v11_v3 = vsub.f32 0.0, %v9_v1 }
   0x4   :  { %v12_v4 = vmul.f32 1.442695, %v10_v2  ;;  %v14_v5 = vmul.f32 1.442695, %v11_v3 }
   0x6   :  { %28 = vpow2.f32 %v12_v4 }
   0x7   :  { %30 = vpow2.f32 %v14_v5 }
  0x10   :  { %v29_v6 = vpop.eup %28 }
  0x11   :  { %v31_v7 = vpop.eup %30  ;;  %v16_v8 = vadd.f32 1.0, %v29_v6 }
  0x12   :  { %v17_v9 = vadd.f32 1.0, %v31_v7 }
  0x13   :  { %32 = vrcp.f32 %v16_v8 }
  0x14   :  { %34 = vrcp.f32 %v17_v9 }
  0x1d   :  { %v33_v10 = vpop.eup %32 }
  0x1e   :  { %v35_v11 = vpop.eup %34  ;;  %22 = vst [vmem:[%s59_s1] sm:$0xff] %v33_v10 }
  0x1f   :  { %23 = vst [vmem:[%s59_s1 + $0x8] sm:$0xff] %v35_v11 }

</bundles_post_ra>
